<compile_context>
chip_gen: v5e
topology: v5e:2x2
jax: 0.10.0
libtpu: 0.0.40
codegen_flags: <defaults>
</compile_context>

<pallas_src>
import functools
import math

import jax
import jax.numpy as jnp
from jax.experimental import pallas as pl
from jax.experimental.pallas import tpu as pltpu


_LANES = 512                            # lane-dense width (multiple of 128)
_TARGET_BLOCK_BYTES = 4 * 1024 * 1024   # ~4 MiB per block (input-dtype bytes)
_MIN_GRID_STEPS = 4                     # keep pipeline + 2-TC sharding alive
_VMEM_LIMIT_BYTES = 48 * 1024 * 1024    # safe on v5e/v6e/v7x (v7x physical 64 MiB)


def _round_up(a, b):
    return -(-a // b) * b


def _sublane_multiple(*dtypes):
    # Packed-sublane multiple of the narrowest dtype touching VMEM tiles.
    min_itemsize = min(jnp.dtype(d).itemsize for d in dtypes)
    return max(8, 32 // min_itemsize)


def _log_magnitude_kernel(x_ref, o_ref, *, eps, inv_log_base):
    # Upcast to f32 so eps=1e-20 never underflows for sub-32-bit inputs.
    x = x_ref[...].astype(jnp.float32)
    y = jnp.log(jnp.abs(x) + eps)          # EUP ln(); abs/add are free VPU filler
    if inv_log_base != 1.0:
        y = y * inv_log_base                # log_b(z) = ln(z) / ln(b), in-kernel
    o_ref[...] = y.astype(o_ref.dtype)


def log_magnitude(x, eps=1e-20, logtype="log"):
    """Pallas implementation of LogMagnitude.forward: log_base(|x| + eps)."""
    if logtype == "log":
        inv_log_base = 1.0
    elif logtype == "log10":
        inv_log_base = 1.0 / math.log(10.0)
    elif logtype == "log2":
        inv_log_base = 1.0 / math.log(2.0)
    else:
        raise ValueError("Invalid log type: {}".format(logtype))

    x = jnp.asarray(x)
    orig_shape = x.shape
    in_dtype = x.dtype
    # torch.log of an integer tensor promotes to float; mirror that.
    out_dtype = in_dtype if jnp.issubdtype(in_dtype, jnp.floating) else jnp.float32

    n = x.size
    if n == 0:
        return x.astype(out_dtype)

    in_itemsize = jnp.dtype(in_dtype).itemsize
    sub = _sublane_multiple(in_dtype, out_dtype)

    kernel = functools.partial(
        _log_magnitude_kernel, eps=float(eps), inv_log_base=inv_log_base
    )
    cparams = pltpu.CompilerParams(
        dimension_semantics=("parallel",),
        vmem_limit_bytes=_VMEM_LIMIT_BYTES,
    )

    if n % _LANES == 0:
        # ---- fast path: lane-dense 2D view, no pad, no slice ----------------
        rows = n // _LANES
        x2 = x.reshape(rows, _LANES)

        budget_rows = max(
            sub, (_TARGET_BLOCK_BYTES // (_LANES * in_itemsize)) // sub * sub
        )
        if rows >= _MIN_GRID_STEPS * sub:
            # Cap the tile so we always have >= ~4 grid steps (pipelining,
            # v7x dual-TC sharding); partial last block is legal/masked.
            tile_rows = min(budget_rows, _round_up(pl.cdiv(rows, _MIN_GRID_STEPS), sub))
        else:
            tile_rows = rows  # tiny input: one full-extent block

        grid = (pl.cdiv(rows, tile_rows),)

        out2 = pl.pallas_call(
            kernel,
            out_shape=jax.ShapeDtypeStruct((rows, _LANES), out_dtype),
            grid_spec=pltpu.PrefetchScalarGridSpec(
                num_scalar_prefetch=0,
                grid=grid,
                in_specs=[pl.BlockSpec((tile_rows, _LANES), lambda i: (i, 0))],
                out_specs=pl.BlockSpec((tile_rows, _LANES), lambda i: (i, 0)),
            ),
            compiler_params=cparams,
        )(x2)
        return out2.reshape(orig_shape)

    # ---- ragged path: flat 1-D BlockSpec, no pad, no slice -------------------
    flat = x.reshape(-1)
    unit = sub * 128  # dtype-aligned element granule (one packed (sub,128) tile)
    budget_elems = max(unit, (_TARGET_BLOCK_BYTES // in_itemsize) // unit * unit)
    if n >= _MIN_GRID_STEPS * unit:
        block_len = min(budget_elems, _round_up(pl.cdiv(n, _MIN_GRID_STEPS), unit))
    else:
        block_len = n  # tiny input: single full-extent block (always legal)

    grid = (pl.cdiv(n, block_len),)

    out_flat = pl.pallas_call(
        kernel,
        out_shape=jax.ShapeDtypeStruct((n,), out_dtype),
        grid_spec=pltpu.PrefetchScalarGridSpec(
            num_scalar_prefetch=0,
            grid=grid,
            in_specs=[pl.BlockSpec((block_len,), lambda i: (i,))],
            out_specs=pl.BlockSpec((block_len,), lambda i: (i,)),
        ),
        compiler_params=cparams,
    )(flat)
    return out_flat.reshape(orig_shape)


if __name__ == "__main__":
    key = jax.random.PRNGKey(0)

    # Small NCHW-like input consistent with a magnitude spectrogram tensor.
    x = jax.random.normal(key, (2, 4, 16, 16), dtype=jnp.float32)

    # Natural log variant (default module config).
    y = jax.block_until_ready(log_magnitude(x, eps=1e-20, logtype="log"))
    ref = jnp.log(jnp.abs(x) + 1e-20)
    assert jnp.allclose(y, ref, atol=1e-5, rtol=1e-5), "log mismatch"

    # log10 variant check.
    y10 = jax.block_until_ready(log_magnitude(x, eps=1e-20, logtype="log10"))
    ref10 = jnp.log(jnp.abs(x) + 1e-20) / jnp.log(10.0)
    assert jnp.allclose(y10, ref10, atol=1e-5, rtol=1e-5), "log10 mismatch"

    # log2 variant check.
    y2 = jax.block_until_ready(log_magnitude(x, eps=1e-20, logtype="log2"))
    ref2 = jnp.log(jnp.abs(x) + 1e-20) / jnp.log(2.0)
    assert jnp.allclose(y2, ref2, atol=1e-5, rtol=1e-5), "log2 mismatch"

    # Larger divisible shape: exercises the multi-step grid (rows=256, ~4 blocks,
    # partial-free pipelined path).
    x_big = jax.random.normal(jax.random.PRNGKey(2), (4, 64, 512), dtype=jnp.float32)
    y_big = jax.block_until_ready(log_magnitude(x_big))
    ref_big = jnp.log(jnp.abs(x_big) + 1e-20)
    assert jnp.allclose(y_big, ref_big, atol=1e-5, rtol=1e-5), "big-shape mismatch"

    # Non-divisible size + bf16 path (exercises the flat 1-D ragged path and the
    # f32 upcast for eps; no pad/slice anywhere).
    x_odd = jax.random.normal(jax.random.PRNGKey(1), (3, 5, 7), dtype=jnp.bfloat16)
    y_odd = jax.block_until_ready(log_magnitude(x_odd))
    ref_odd = jnp.log(jnp.abs(x_odd.astype(jnp.float32)) + 1e-20).astype(jnp.bfloat16)
    assert jnp.allclose(
        y_odd.astype(jnp.float32), ref_odd.astype(jnp.float32), atol=1e-2, rtol=1e-2
    ), "bf16/odd-shape mismatch"

    print("KERNEL_OK")
</pallas_src>

<mosaic_0001>
module attributes {stable_mosaic.version = 11 : i64} {
  func.func @_log_magnitude_kernel(%arg0: i32, %arg1: memref<4x512xf32, #tpu.memory_space<vmem>>, %arg2: memref<4x512xf32, #tpu.memory_space<vmem>>) attributes {dimension_semantics = [#tpu.dimension_semantics<parallel>], iteration_bounds = array<i64: 1>, scalar_prefetch = 0 : i64, scratch_operands = 0 : i64, tpu.core_type = #tpu.core_type<tc>, window_params = [{transform_indices = @transform_0, window_bounds = array<i64: 4, 512>}, {transform_indices = @transform_1, window_bounds = array<i64: 4, 512>}]} {
    %c0 = arith.constant 0 : index
    %c0_0 = arith.constant 0 : index
    %0 = vector.load %arg1[%c0, %c0_0] : memref<4x512xf32, #tpu.memory_space<vmem>>, vector<4x512xf32>
    %1 = math.absf %0 : vector<4x512xf32>
    %cst = arith.constant 9.99999968E-21 : f32
    %2 = vector.broadcast %cst : f32 to vector<4x512xf32>
    %3 = arith.addf %1, %2 : vector<4x512xf32>
    %4 = math.log %3 : vector<4x512xf32>
    %c0_1 = arith.constant 0 : index
    %c0_2 = arith.constant 0 : index
    %5 = vector.load %arg2[%c0_1, %c0_2] : memref<4x512xf32, #tpu.memory_space<vmem>>, vector<4x512xf32>
    tpu.vector_store %arg2[%c0_1, %c0_2], %4 {strides = array<i32>} : memref<4x512xf32, #tpu.memory_space<vmem>>, vector<4x512xf32>,
    return
  }
  func.func @transform_0(%arg0: i32) -> (i32, i32) {
    %c0_i32 = arith.constant 0 : i32
    %c0_i32_0 = arith.constant 0 : i32
    return %arg0, %c0_i32 : i32, i32
  }
  func.func @transform_1(%arg0: i32) -> (i32, i32) {
    %c0_i32 = arith.constant 0 : i32
    %c0_i32_0 = arith.constant 0 : i32
    return %arg0, %c0_i32 : i32, i32
  }
}

</mosaic_0001>

<bundles_post_ra>
// kernel: tpu_custom_call.1
= control target key start
LH: loop header
LB: loop body
LE: loop exit
PB: predicated region body
PF: predicated region fallthrough
CT: control target
= control target key end

     0   :  { %6 = vsyncpa [#allocation3], 0  ;;  %s128_s0 = inlined_call_operand.hbm [shape: f32[4,512], index: 0, kind: input, shape index: {}]   ;;  %s129_s1 = inlined_call_operand.hbm [shape: f32[4,512], index: 1, kind: output, shape index: {}]  }
   0x1   :  { %7 = vsyncpa [#allocation4], 0  ;;  %s13_s8 = sshll.u32 %s128_s0, 4  ;;  %s110_s9 = smov [#allocation2]   ;;  %s14_s8 = int_to_ptr.hbm [resolvable:$true] %s13_s8 }
   0x2   :  { %s15_s10 = sshll.u32 %s110_s9, 4  ;;  %s16_s10 = int_to_ptr.vmem [resolvable:$true] %s15_s10 }
   0x3   :  { %18 = dma.hbm_to_vmem [thread:$0]  %s14_s8, 256, %s16_s10, [#allocation3]  }
   0x4   :  { %106 = dma.done.wait [#allocation3], 256  }
   0x5   :  { %107 = vsyncadd [#allocation3], 4294967040  ;;  %v23_v0 = vld [vmem:[#allocation2] sm:$0xff]  ;;  %v24_v1 = vld [vmem:[#allocation2 + $0x8] sm:$0xff]  ;;  %s111_s11 = smov [#allocation5]   ;;  %s42_s0 = sshll.u32 %s129_s1, 4  ;;  %s43_s0 = int_to_ptr.hbm [resolvable:$true] %s42_s0 }
   0x6   :  { %v25_v2 = vand.u32 2147483647, %v23_v0  ;;  %v26_v3 = vand.u32 2147483647, %v24_v1  ;;  %s40_s12 = sshll.u32 %s111_s11, 4  ;;  %s41_s12 = int_to_ptr.vmem [resolvable:$true] %s40_s12 }
   0x8   :  { %v27_v4 = vadd.f32 1e-20, %v25_v2  ;;  %v28_v5 = vadd.f32 1e-20, %v26_v3 }
   0xa   :  { %54 = vlog2.f32 %v27_v4 }
   0xb   :  { %56 = vlog2.f32 %v28_v5 }
  0x10   :  { %v55_v6 = vpop.eup %54 }
  0x11   :  { %v57_v7 = vpop.eup %56  ;;  %v30_v8 = vmul.f32 0.6931472, %v55_v6 }
  0x12   :  { %v32_v9 = vmul.f32 0.6931472, %v57_v7 }
  0x13   :  { %33 = vst [vmem:[#allocation5] sm:$0xff] %v30_v8 }
  0x14   :  { %34 = vst [vmem:[#allocation5 + $0x8] sm:$0xff] %v32_v9 }
  0x15   :  { %45 = dma.vmem_to_hbm [thread:$0]  %s41_s12, 256, %s43_s0, [#allocation4]  }
  0x16   :  { %108 = dma.done.wait [#allocation4], 256  }
  0x17   :  { %109 = vsyncadd [#allocation4], 4294967040 }
  0x18   :  { %50 = vsyncpa [#allocation3], 1 }
  0x19   :  { %51 = vsyncpa [#allocation4], 1 }

</bundles_post_ra>
